<compile_context>
chip_gen: v5e
topology: v5e:2x2
jax: 0.10.0
libtpu: 0.0.40
codegen_flags: <defaults>
</compile_context>

<pallas_src>
import math

import jax
import jax.numpy as jnp
import numpy as np
from jax.experimental import pallas as pl
from jax.experimental.pallas import tpu as pltpu


LANE = 128


def _round_up(x, m=LANE):
    return ((x + m - 1) // m) * m


def _make_mlp_kernel(num_linear, use_dropout, outermost_linear):
    """Fused MLP kernel body.

    Kernel refs: (x_tile, [mask_tile], w0, b0, w1, b1, ..., out_tile)
      x_tile   : [tm, in_pad]
      mask_tile: [num_linear-1, tm, hidden_pad]  (pre-scaled by 1/keep)
      wi       : [fan_in_pad, fan_out_pad]   bi: [1, fan_out_pad]
    """

    def kernel(*refs):
        o_ref = refs[-1]
        x_ref = refs[0]
        idx = 1
        mask_ref = None
        if use_dropout:
            mask_ref = refs[1]
            idx = 2
        wb = refs[idx:-1]

        h = x_ref[...].astype(jnp.float32)

        for li in range(num_linear):
            # MC_dropout is applied before every layer except the first
            # (matches `if pdrop > 0 and i > 0` in the torch forward).
            if use_dropout and li > 0:
                h = h * mask_ref[li - 1]           # mask already scaled by 1/keep

            w = wb[2 * li][...]
            b = wb[2 * li + 1][...]
            h = jnp.dot(h, w, preferred_element_type=jnp.float32) + b

            if li < num_linear - 1:
                h = jnp.maximum(h, 0.0)            # ReLU (nonlinearity='relu')
            elif not outermost_linear:
                h = jax.nn.sigmoid(h)              # final Sigmoid (EUP)

        o_ref[...] = h.astype(o_ref.dtype)

    return kernel


def init_params(key, in_features, out_features, num_hidden_layers, hidden_features):
    """Deterministic parameter init matching the torch module:
       weights: kaiming_normal_(relu, fan_in)  (std = sqrt(2/fan_in))
       biases : torch.nn.Linear default  U(-1/sqrt(fan_in), 1/sqrt(fan_in))
    Weights are stored as [fan_in, fan_out] (already transposed)."""
    dims = [in_features] + [hidden_features] * (num_hidden_layers + 1) + [out_features]
    params = []
    for i in range(len(dims) - 1):
        fan_in, fan_out = dims[i], dims[i + 1]
        key, kw, kb = jax.random.split(key, 3)
        std = math.sqrt(2.0 / fan_in)
        w = jax.random.normal(kw, (fan_in, fan_out), jnp.float32) * std
        bound = 1.0 / math.sqrt(fan_in)
        b = jax.random.uniform(kb, (1, fan_out), jnp.float32, minval=-bound, maxval=bound)
        params.append((w, b))
    return params


def uncertain_fc_forward(coords, params, *, pdrop=0.0, outermost_linear=False,
                         zero_pad=0, sample=True, seed=0, tm=None):
    """Pallas implementation of UncertainFCBlock.forward. Returns {'mean': ...}."""
    N, in_f = coords.shape
    num_linear = len(params)
    out_f = params[-1][0].shape[1]

    # dropout only active when (training or sample) — mirror that here
    eff_pdrop = float(pdrop) if sample else 0.0
    use_dropout = eff_pdrop > 0.0

    # ---- batch row-tile: as large as possible (weights are tiny & resident) ----
    if tm is None:
        tm = N if N <= 1024 else 1024
    assert N % tm == 0, "batch must be divisible by the row-tile size"
    grid = (N // tm,)

    # ---- lane-dense padding of all feature dims (exact: zero pads) ----
    in_pad = _round_up(in_f)
    coords_p = jnp.pad(coords, ((0, 0), (0, in_pad - in_f)))

    padded_params = []
    for (w, b) in params:
        fi, fo = w.shape
        fi_p, fo_p = _round_up(fi), _round_up(fo)
        w_p = jnp.pad(w, ((0, fi_p - fi), (0, fo_p - fo)))
        b_p = jnp.pad(b, ((0, 0), (0, fo_p - fo)))
        padded_params.append((w_p, b_p))
    out_pad = padded_params[-1][0].shape[1]

    # ---- MC-dropout masks, pre-scaled by 1/keep (inverted dropout, = F.dropout) ----
    # TODO(synk): in-kernel hardware PRNG (pltpu.prng_seed/prng_random_bits) would
    # avoid streaming masks from HBM, but has no interpret-mode lowering; masks are
    # generated in the wrapper instead.
    mask_inputs = []
    mask_specs = []
    if use_dropout:
        hidden_pad = padded_params[1][0].shape[0]  # fan_in of every layer i >= 1
        num_masks = num_linear - 1
        keep = 1.0 - eff_pdrop
        mkey = jax.random.PRNGKey(seed)
        masks = jax.random.bernoulli(mkey, keep, (num_masks, N, hidden_pad))
        masks = masks.astype(jnp.float32) * (1.0 / keep)
        mask_inputs = [masks]
        mask_specs = [pl.BlockSpec((num_masks, tm, hidden_pad), lambda i: (0, i, 0))]

    # ---- specs ----
    in_specs = [pl.BlockSpec((tm, in_pad), lambda i: (i, 0))] + mask_specs
    flat_params = []
    for w_p, b_p in padded_params:
        in_specs.append(pl.BlockSpec(w_p.shape, lambda i: (0, 0)))   # resident weight
        in_specs.append(pl.BlockSpec(b_p.shape, lambda i: (0, 0)))   # resident bias
        flat_params += [w_p, b_p]

    kernel = _make_mlp_kernel(num_linear, use_dropout, outermost_linear)

    out_padded = pl.pallas_call(
        kernel,
        out_shape=jax.ShapeDtypeStruct((N, out_pad), coords.dtype),
        grid=grid,
        in_specs=in_specs,
        out_specs=pl.BlockSpec((tm, out_pad), lambda i: (i, 0)),
        compiler_params=pltpu.CompilerParams(dimension_semantics=("parallel",)),
    )(coords_p, *mask_inputs, *flat_params)

    out = out_padded[:, :out_f]

    if zero_pad > 0:
        # TODO(synk): mirrors the torch reshape glue, which only holds when
        # N * out_f == width**2 (effectively N == 1); pure reshape/pad, left in JAX.
        width = int(np.sqrt(out.shape[1]))
        img = out.reshape((width, width))
        img = jnp.pad(img, ((zero_pad, zero_pad), (zero_pad, zero_pad)))
        out = img.reshape((1, -1, 1))

    return {"mean": out}


def _ref_forward(coords, params, outermost_linear=False):
    """Plain-JAX reference (pdrop = 0) for correctness checking."""
    h = coords.astype(jnp.float32)
    for i, (w, b) in enumerate(params):
        h = h @ w + b
        if i < len(params) - 1:
            h = jnp.maximum(h, 0.0)
        elif not outermost_linear:
            h = jax.nn.sigmoid(h)
    return h.astype(coords.dtype)


if __name__ == "__main__":
    # Module configuration (small, consistent with the torch __init__ signature)
    in_features = 16
    out_features = 16
    num_hidden_layers = 2
    hidden_features = 64
    N = 128            # number of coordinate rows

    key = jax.random.PRNGKey(0)
    kx, kp = jax.random.split(key)
    coords = jax.random.normal(kx, (N, in_features), jnp.float32)
    params = init_params(kp, in_features, out_features, num_hidden_layers, hidden_features)

    # 1) deterministic path (uncertainty_cfg.pdrop = 0): check against JAX reference
    out = uncertain_fc_forward(coords, params, pdrop=0.0, outermost_linear=False)
    mean = jax.block_until_ready(out["mean"])
    ref = _ref_forward(coords, params, outermost_linear=False)
    np.testing.assert_allclose(np.asarray(mean), np.asarray(ref), rtol=1e-5, atol=1e-5)

    # 2) MC-dropout path (uncertainty_cfg.pdrop > 0, sample=True): stochastic output,
    #    check shape / finiteness / sigmoid range.
    out_mc = uncertain_fc_forward(coords, params, pdrop=0.3, outermost_linear=False,
                                  sample=True, seed=123)
    mc = jax.block_until_ready(out_mc["mean"])
    assert mc.shape == (N, out_features)
    mc_np = np.asarray(mc)
    assert np.all(np.isfinite(mc_np)) and np.all(mc_np > 0.0) and np.all(mc_np < 1.0)

    # sample=False must fall back to the deterministic path (dropout disabled)
    out_ns = uncertain_fc_forward(coords, params, pdrop=0.3, outermost_linear=False,
                                  sample=False, seed=123)
    np.testing.assert_allclose(np.asarray(jax.block_until_ready(out_ns["mean"])),
                               np.asarray(ref), rtol=1e-5, atol=1e-5)

    print("KERNEL_OK")
</pallas_src>

<mosaic_0001>
module attributes {stable_mosaic.version = 11 : i64} {
  func.func @kernel(%arg0: i32, %arg1: memref<128x128xf32, #tpu.memory_space<vmem>>, %arg2: memref<128x128xf32, #tpu.memory_space<vmem>>, %arg3: memref<1x128xf32, #tpu.memory_space<vmem>>, %arg4: memref<128x128xf32, #tpu.memory_space<vmem>>, %arg5: memref<1x128xf32, #tpu.memory_space<vmem>>, %arg6: memref<128x128xf32, #tpu.memory_space<vmem>>, %arg7: memref<1x128xf32, #tpu.memory_space<vmem>>, %arg8: memref<128x128xf32, #tpu.memory_space<vmem>>, %arg9: memref<1x128xf32, #tpu.memory_space<vmem>>, %arg10: memref<128x128xf32, #tpu.memory_space<vmem>>) attributes {dimension_semantics = [#tpu.dimension_semantics<parallel>], iteration_bounds = array<i64: 1>, scalar_prefetch = 0 : i64, scratch_operands = 0 : i64, tpu.core_type = #tpu.core_type<tc>, window_params = [{transform_indices = @transform_0, window_bounds = array<i64: 128, 128>}, {pipeline_mode = #tpu.pipeline_mode<synchronous>, transform_indices = @transform_1, window_bounds = array<i64: 128, 128>}, {pipeline_mode = #tpu.pipeline_mode<synchronous>, transform_indices = @transform_2, window_bounds = array<i64: 1, 128>}, {pipeline_mode = #tpu.pipeline_mode<synchronous>, transform_indices = @transform_3, window_bounds = array<i64: 128, 128>}, {pipeline_mode = #tpu.pipeline_mode<synchronous>, transform_indices = @transform_4, window_bounds = array<i64: 1, 128>}, {pipeline_mode = #tpu.pipeline_mode<synchronous>, transform_indices = @transform_5, window_bounds = array<i64: 128, 128>}, {pipeline_mode = #tpu.pipeline_mode<synchronous>, transform_indices = @transform_6, window_bounds = array<i64: 1, 128>}, {pipeline_mode = #tpu.pipeline_mode<synchronous>, transform_indices = @transform_7, window_bounds = array<i64: 128, 128>}, {pipeline_mode = #tpu.pipeline_mode<synchronous>, transform_indices = @transform_8, window_bounds = array<i64: 1, 128>}, {transform_indices = @transform_9, window_bounds = array<i64: 128, 128>}]} {
    %c0 = arith.constant 0 : index
    %c0_0 = arith.constant 0 : index
    %0 = vector.load %arg1[%c0, %c0_0] : memref<128x128xf32, #tpu.memory_space<vmem>>, vector<128x128xf32>
    %c0_1 = arith.constant 0 : index
    %c0_2 = arith.constant 0 : index
    %1 = vector.load %arg2[%c0_1, %c0_2] : memref<128x128xf32, #tpu.memory_space<vmem>>, vector<128x128xf32>
    %c0_3 = arith.constant 0 : index
    %c0_4 = arith.constant 0 : index
    %2 = vector.load %arg3[%c0_3, %c0_4] : memref<1x128xf32, #tpu.memory_space<vmem>>, vector<1x128xf32>
    %cst = arith.constant dense<0.000000e+00> : vector<128x128xf32>
    %3 = tpu.matmul %0, %1, %cst {dimension_numbers = #tpu.dot_dimension_numbers<[1], [0], [0], [1], [0, 0, 1, 1], [], []>} : vector<128x128xf32>, vector<128x128xf32>, vector<128x128xf32> -> vector<128x128xf32>
    %4 = vector.broadcast %2 : vector<1x128xf32> to vector<128x128xf32>
    %5 = arith.addf %3, %4 : vector<128x128xf32>
    %cst_5 = arith.constant 0.000000e+00 : f32
    %6 = vector.broadcast %cst_5 : f32 to vector<128x128xf32>
    %7 = arith.maximumf %5, %6 : vector<128x128xf32>
    %c0_6 = arith.constant 0 : index
    %c0_7 = arith.constant 0 : index
    %8 = vector.load %arg4[%c0_6, %c0_7] : memref<128x128xf32, #tpu.memory_space<vmem>>, vector<128x128xf32>
    %c0_8 = arith.constant 0 : index
    %c0_9 = arith.constant 0 : index
    %9 = vector.load %arg5[%c0_8, %c0_9] : memref<1x128xf32, #tpu.memory_space<vmem>>, vector<1x128xf32>
    %cst_10 = arith.constant dense<0.000000e+00> : vector<128x128xf32>
    %10 = tpu.matmul %7, %8, %cst_10 {dimension_numbers = #tpu.dot_dimension_numbers<[1], [0], [0], [1], [0, 0, 1, 1], [], []>} : vector<128x128xf32>, vector<128x128xf32>, vector<128x128xf32> -> vector<128x128xf32>
    %11 = vector.broadcast %9 : vector<1x128xf32> to vector<128x128xf32>
    %12 = arith.addf %10, %11 : vector<128x128xf32>
    %cst_11 = arith.constant 0.000000e+00 : f32
    %13 = vector.broadcast %cst_11 : f32 to vector<128x128xf32>
    %14 = arith.maximumf %12, %13 : vector<128x128xf32>
    %c0_12 = arith.constant 0 : index
    %c0_13 = arith.constant 0 : index
    %15 = vector.load %arg6[%c0_12, %c0_13] : memref<128x128xf32, #tpu.memory_space<vmem>>, vector<128x128xf32>
    %c0_14 = arith.constant 0 : index
    %c0_15 = arith.constant 0 : index
    %16 = vector.load %arg7[%c0_14, %c0_15] : memref<1x128xf32, #tpu.memory_space<vmem>>, vector<1x128xf32>
    %cst_16 = arith.constant dense<0.000000e+00> : vector<128x128xf32>
    %17 = tpu.matmul %14, %15, %cst_16 {dimension_numbers = #tpu.dot_dimension_numbers<[1], [0], [0], [1], [0, 0, 1, 1], [], []>} : vector<128x128xf32>, vector<128x128xf32>, vector<128x128xf32> -> vector<128x128xf32>
    %18 = vector.broadcast %16 : vector<1x128xf32> to vector<128x128xf32>
    %19 = arith.addf %17, %18 : vector<128x128xf32>
    %cst_17 = arith.constant 0.000000e+00 : f32
    %20 = vector.broadcast %cst_17 : f32 to vector<128x128xf32>
    %21 = arith.maximumf %19, %20 : vector<128x128xf32>
    %c0_18 = arith.constant 0 : index
    %c0_19 = arith.constant 0 : index
    %22 = vector.load %arg8[%c0_18, %c0_19] : memref<128x128xf32, #tpu.memory_space<vmem>>, vector<128x128xf32>
    %c0_20 = arith.constant 0 : index
    %c0_21 = arith.constant 0 : index
    %23 = vector.load %arg9[%c0_20, %c0_21] : memref<1x128xf32, #tpu.memory_space<vmem>>, vector<1x128xf32>
    %cst_22 = arith.constant dense<0.000000e+00> : vector<128x128xf32>
    %24 = tpu.matmul %21, %22, %cst_22 {dimension_numbers = #tpu.dot_dimension_numbers<[1], [0], [0], [1], [0, 0, 1, 1], [], []>} : vector<128x128xf32>, vector<128x128xf32>, vector<128x128xf32> -> vector<128x128xf32>
    %25 = vector.broadcast %23 : vector<1x128xf32> to vector<128x128xf32>
    %26 = arith.addf %24, %25 : vector<128x128xf32>
    %27 = arith.negf %26 : vector<128x128xf32>
    %28 = math.exp %27 : vector<128x128xf32>
    %cst_23 = arith.constant 1.000000e+00 : f32
    %29 = vector.broadcast %cst_23 : f32 to vector<128x128xf32>
    %30 = arith.addf %29, %28 : vector<128x128xf32>
    %31 = arith.divf %29, %30 : vector<128x128xf32>
    %c0_24 = arith.constant 0 : index
    %c0_25 = arith.constant 0 : index
    %32 = vector.load %arg10[%c0_24, %c0_25] : memref<128x128xf32, #tpu.memory_space<vmem>>, vector<128x128xf32>
    tpu.vector_store %arg10[%c0_24, %c0_25], %31 {strides = array<i32>} : memref<128x128xf32, #tpu.memory_space<vmem>>, vector<128x128xf32>,
    return
  }
  func.func @transform_0(%arg0: i32) -> (i32, i32) {
    %c0_i32 = arith.constant 0 : i32
    %c0_i32_0 = arith.constant 0 : i32
    return %arg0, %c0_i32 : i32, i32
  }
  func.func @transform_1(%arg0: i32) -> (i32, i32) {
    %c0_i32 = arith.constant 0 : i32
    %c0_i32_0 = arith.constant 0 : i32
    %c0_i32_1 = arith.constant 0 : i32
    return %c0_i32, %c0_i32_0 : i32, i32
  }
  func.func @transform_2(%arg0: i32) -> (i32, i32) {
    %c0_i32 = arith.constant 0 : i32
    %c0_i32_0 = arith.constant 0 : i32
    %c0_i32_1 = arith.constant 0 : i32
    return %c0_i32, %c0_i32_0 : i32, i32
  }
  func.func @transform_3(%arg0: i32) -> (i32, i32) {
    %c0_i32 = arith.constant 0 : i32
    %c0_i32_0 = arith.constant 0 : i32
    %c0_i32_1 = arith.constant 0 : i32
    return %c0_i32, %c0_i32_0 : i32, i32
  }
  func.func @transform_4(%arg0: i32) -> (i32, i32) {
    %c0_i32 = arith.constant 0 : i32
    %c0_i32_0 = arith.constant 0 : i32
    %c0_i32_1 = arith.constant 0 : i32
    return %c0_i32, %c0_i32_0 : i32, i32
  }
  func.func @transform_5(%arg0: i32) -> (i32, i32) {
    %c0_i32 = arith.constant 0 : i32
    %c0_i32_0 = arith.constant 0 : i32
    %c0_i32_1 = arith.constant 0 : i32
    return %c0_i32, %c0_i32_0 : i32, i32
  }
  func.func @transform_6(%arg0: i32) -> (i32, i32) {
    %c0_i32 = arith.constant 0 : i32
    %c0_i32_0 = arith.constant 0 : i32
    %c0_i32_1 = arith.constant 0 : i32
    return %c0_i32, %c0_i32_0 : i32, i32
  }
  func.func @transform_7(%arg0: i32) -> (i32, i32) {
    %c0_i32 = arith.constant 0 : i32
    %c0_i32_0 = arith.constant 0 : i32
    %c0_i32_1 = arith.constant 0 : i32
    return %c0_i32, %c0_i32_0 : i32, i32
  }
  func.func @transform_8(%arg0: i32) -> (i32, i32) {
    %c0_i32 = arith.constant 0 : i32
    %c0_i32_0 = arith.constant 0 : i32
    %c0_i32_1 = arith.constant 0 : i32
    return %c0_i32, %c0_i32_0 : i32, i32
  }
  func.func @transform_9(%arg0: i32) -> (i32, i32) {
    %c0_i32 = arith.constant 0 : i32
    %c0_i32_0 = arith.constant 0 : i32
    return %arg0, %c0_i32 : i32, i32
  }
}

</mosaic_0001>

<bundles_post_ra>
// kernel: tpu_custom_call.1
= control target key start
LH: loop header
LB: loop body
LE: loop exit
PB: predicated region body
PF: predicated region fallthrough
CT: control target
= control target key end

     0   :  { %14 = vsyncpa [#allocation3], 0  ;;  %s1260_s0 = inlined_call_operand.hbm [shape: f32[128,128], index: 0, kind: input, shape index: {}]   ;;  %s1261_s1 = inlined_call_operand.hbm [shape: f32[128,128], index: 1, kind: input, shape index: {}]   ;;  %s1262_s2 = inlined_call_operand.vmem [shape: f32[1,128], index: 2, kind: input, shape index: {}]   ;;  %s1263_s3 = inlined_call_operand.hbm [shape: f32[128,128], index: 3, kind: input, shape index: {}]   ;;  %s1264_s4 = inlined_call_operand.vmem [shape: f32[1,128], index: 4, kind: input, shape index: {}]   ;;  %s1265_s5 = inlined_call_operand.hbm [shape: f32[128,128], index: 5, kind: input, shape index: {}]   ;;  %s1266_s6 = inlined_call_operand.vmem [shape: f32[1,128], index: 6, kind: input, shape index: {}]   ;;  %s1267_s7 = inlined_call_operand.hbm [shape: f32[128,128], index: 7, kind: input, shape index: {}]   ;;  %s1268_s8 = inlined_call_operand.vmem [shape: f32[1,128], index: 8, kind: input, shape index: {}]   ;;  %s1269_s9 = inlined_call_operand.hbm [shape: f32[128,128], index: 9, kind: output, shape index: {}]  }
   0x1   :  { %15 = vsyncpa [#allocation6], 0 }
   0x2   :  { %16 = vsyncpa [#allocation9], 0 }
   0x3   :  { %17 = vsyncpa [#allocation4], 0  ;;  %s35_s11 = sshll.u32 %s1261_s1, 4  ;;  %s1100_s12 = smov [#allocation5]   ;;  %s36_s11 = int_to_ptr.hbm [resolvable:$true] %s35_s11 }
   0x4   :  { %s37_s13 = sshll.u32 %s1100_s12, 4  ;;  %s65_s16 = sshll.u32 %s1265_s5, 4  ;;  %s38_s13 = int_to_ptr.vmem [resolvable:$true] %s37_s13  ;;  %s66_s16 = int_to_ptr.hbm [resolvable:$true] %s65_s16 }
   0x5   :  { %s1101_s17 = smov 128   ;;  %s1102_s18 = smov 8  }
   0x6   :  { %43 = dma.hbm_to_vmem [thread:$0]  %s36_s11, 2048, %s38_s13, [#allocation6], %s1101_s17, %s1101_s17, %s1102_s18  }
   0x7   :  { %s1103_s19 = smov [#allocation8]   ;;  %s22_s1 = sshll.u32 %s1260_s0, 4  ;;  %s23_s1 = int_to_ptr.hbm [resolvable:$true] %s22_s1 }
   0x8   :  { %s67_s20 = sshll.u32 %s1103_s19, 4  ;;  %s50_s24 = sshll.u32 %s1263_s3, 4  ;;  %s68_s20 = int_to_ptr.vmem [resolvable:$true] %s67_s20  ;;  %s51_s24 = int_to_ptr.hbm [resolvable:$true] %s50_s24 }
   0x9   :  { %73 = dma.hbm_to_vmem [thread:$0]  %s66_s16, 2048, %s68_s20, [#allocation9], %s1101_s17, %s1101_s17, %s1102_s18  }
   0xa   :  { %s1104_s25 = smov [#allocation2]   ;;  %s1105_s27 = smov [#allocation7]  }
   0xb   :  { %s24_s26 = sshll.u32 %s1104_s25, 4  ;;  %s52_s0 = sshll.u32 %s1105_s27, 4  ;;  %s25_s26 = int_to_ptr.vmem [resolvable:$true] %s24_s26  ;;  %s53_s0 = int_to_ptr.vmem [resolvable:$true] %s52_s0 }
   0xc   :  { %30 = dma.hbm_to_vmem [thread:$0]  %s23_s1, 2048, %s25_s26, [#allocation3], %s1101_s17, %s1101_s17, %s1102_s18  }
   0xd   :  { %s80_s30 = sshll.u32 %s1267_s7, 4  ;;  %s1106_s3 = smov [#allocation10]   ;;  %s81_s30 = int_to_ptr.hbm [resolvable:$true] %s80_s30 }
   0xe   :  { %58 = dma.hbm_to_vmem [thread:$0]  %s51_s24, 2048, %s53_s0, [#allocation6], %s1101_s17, %s1101_s17, %s1102_s18  }
   0xf   :  { %s82_s10 = sshll.u32 %s1106_s3, 4  ;;  %s83_s10 = int_to_ptr.vmem [resolvable:$true] %s82_s10 }
  0x10   :  { %88 = dma.hbm_to_vmem [thread:$0]  %s81_s30, 2048, %s83_s10, [#allocation9], %s1101_s17, %s1101_s17, %s1102_s18  }
  0x11   :  { %1092 = dma.done.wait [#allocation3], 2048  }
  0x12   :  { %1093 = vsyncadd [#allocation3], 4294965248 }
  0x13   :  { %1094 = dma.done.wait [#allocation6], 4096  }
  0x14   :  { %1095 = vsyncadd [#allocation6], 4294963200 }
  0x15   :  { %1096 = dma.done.wait [#allocation9], 4096  }
  0x16   :  { %1097 = vsyncadd [#allocation9], 4294963200  ;;  %v142_v0 = vld [vmem:[#allocation5 + $0x78] sm:$0xff]  ;;  %v141_v1 = vld [vmem:[#allocation5 + $0x70] sm:$0xff]  ;;  %s841_s20 = sshll.u32 %s1269_s9, 4  ;;  %s842_s20 = int_to_ptr.hbm [resolvable:$true] %s841_s20 }
  0x17   :  { %147 = vmatpush.msra.mxu0 %v142_v0  ;;  %v140_v2 = vld [vmem:[#allocation5 + $0x68] sm:$0xff]  ;;  %v139_v3 = vld [vmem:[#allocation5 + $0x60] sm:$0xff]  ;;  %v138_v4 = vld [vmem:[#allocation5 + $0x58] sm:$0xff] }
  0x18   :  { %v137_v5 = vld [vmem:[#allocation5 + $0x50] sm:$0xff]  ;;  %v136_v6 = vld [vmem:[#allocation5 + $0x48] sm:$0xff]  ;;  %v135_v7 = vld [vmem:[#allocation5 + $0x40] sm:$0xff] }
  0x19   :  { %148 = vmatpush.msra.mxu0 %v141_v1  ;;  %v134_v8 = vld [vmem:[#allocation5 + $0x38] sm:$0xff]  ;;  %v133_v9 = vld [vmem:[#allocation5 + $0x30] sm:$0xff]  ;;  %v132_v10 = vld [vmem:[#allocation5 + $0x28] sm:$0xff] }
  0x1a   :  { %v131_v11 = vld [vmem:[#allocation5 + $0x20] sm:$0xff]  ;;  %v130_v12 = vld [vmem:[#allocation5 + $0x18] sm:$0xff]  ;;  %v129_v13 = vld [vmem:[#allocation5 + $0x10] sm:$0xff] }
  0x1b   :  { %149 = vmatpush.msra.mxu0 %v140_v2  ;;  %v128_v14 = vld [vmem:[#allocation5 + $0x8] sm:$0xff]  ;;  %v127_v15 = vld [vmem:[#allocation5] sm:$0xff]  ;;  %v113_v18 = vld [vmem:[#allocation2 + $0x10] sm:$0xff] }
  0x1c   :  { %v111_v16 = vld [vmem:[#allocation2] sm:$0xff]  ;;  %v112_v17 = vld [vmem:[#allocation2 + $0x8] sm:$0xff]  ;;  %v114_v19 = vld [vmem:[#allocation2 + $0x18] sm:$0xff] }
  0x1d   :  { %150 = vmatpush.msra.mxu0 %v139_v3  ;;  %v115_v20 = vld [vmem:[#allocation2 + $0x20] sm:$0xff]  ;;  %v116_v21 = vld [vmem:[#allocation2 + $0x28] sm:$0xff]  ;;  %v117_v22 = vld [vmem:[#allocation2 + $0x30] sm:$0xff] }
  0x1e   :  { %v118_v23 = vld [vmem:[#allocation2 + $0x38] sm:$0xff]  ;;  %v119_v24 = vld [vmem:[#allocation2 + $0x40] sm:$0xff]  ;;  %v242_v26 = vld [vmem:[#allocation7 + $0x70] sm:$0xff] }
  0x1f   :  { %151 = vmatpush.msra.mxu0 %v138_v4  ;;  %v243_v25 = vld [vmem:[#allocation7 + $0x78] sm:$0xff]  ;;  %v241_v27 = vld [vmem:[#allocation7 + $0x68] sm:$0xff]  ;;  %v240_v29 = vld [vmem:[#allocation7 + $0x60] sm:$0xff] }
  0x20   :  { %248 = vmatpush.msra.mxu1 %v243_v25  ;;  %v120_v28 = vld [vmem:[#allocation2 + $0x48] sm:$0xff]  ;;  %v239_v30 = vld [vmem:[#allocation7 + $0x58] sm:$0xff]  ;;  %v238_v31 = vld [vmem:[#allocation7 + $0x50] sm:$0xff] }
  0x21   :  { %152 = vmatpush.msra.mxu0 %v137_v5  ;;  %v237_v32 = vld [vmem:[#allocation7 + $0x48] sm:$0xff]  ;;  %v121_v33 = vld [vmem:[#allocation2 + $0x50] sm:$0xff]  ;;  %v236_v34 = vld [vmem:[#allocation7 + $0x40] sm:$0xff] }
  0x22   :  { %249 = vmatpush.msra.mxu1 %v242_v26  ;;  %v235_v35 = vld [vmem:[#allocation7 + $0x38] sm:$0xff]  ;;  %v234_v36 = vld [vmem:[#allocation7 + $0x30] sm:$0xff]  ;;  %v233_v37 = vld [vmem:[#allocation7 + $0x28] sm:$0xff] }
  0x23   :  { %153 = vmatpush.msra.mxu0 %v136_v6  ;;  %v122_v38 = vld [vmem:[#allocation2 + $0x58] sm:$0xff]  ;;  %v232_v39 = vld [vmem:[#allocation7 + $0x20] sm:$0xff]  ;;  %v230_v41 = vld [vmem:[#allocation7 + $0x10] sm:$0xff] }
  0x24   :  { %250 = vmatpush.msra.mxu1 %v241_v27  ;;  %v231_v40 = vld [vmem:[#allocation7 + $0x18] sm:$0xff]  ;;  %v123_v42 = vld [vmem:[#allocation2 + $0x60] sm:$0xff]  ;;  %v229_v43 = vld [vmem:[#allocation7 + $0x8] sm:$0xff] }
  0x25   :  { %154 = vmatpush.msra.mxu0 %v135_v7  ;;  %v228_v44 = vld [vmem:[#allocation7] sm:$0xff]  ;;  %v124_v45 = vld [vmem:[#allocation2 + $0x68] sm:$0xff]  ;;  %v125_v46 = vld [vmem:[#allocation2 + $0x70] sm:$0xff] }
  0x26   :  { %251 = vmatpush.msra.mxu1 %v240_v29  ;;  %v126_v47 = vld [vmem:[#allocation2 + $0x78] sm:$0xff]  ;;  %v1191_v48 = vld [vmem:[%s1262_s2] ss:$0 sm:$0xff]  ;;  %v335_v29 = vld [vmem:[#allocation8 + $0x30] sm:$0xff] }
  0x27   :  { %155 = vmatpush.msra.mxu0 %v134_v8  ;;  %v337_v25 = vld [vmem:[#allocation8 + $0x40] sm:$0xff]  ;;  %v336_v26 = vld [vmem:[#allocation8 + $0x38] sm:$0xff] }
  0x28   :  { %252 = vmatpush.msra.mxu1 %v239_v30 }
  0x29   :  { %156 = vmatpush.msra.mxu0 %v133_v9 }
  0x2a   :  { %253 = vmatpush.msra.mxu1 %v238_v31  ;;  %v334_v31 = vld [vmem:[#allocation8 + $0x28] sm:$0xff] }
  0x2b   :  { %157 = vmatpush.msra.mxu0 %v132_v10 }
  0x2c   :  { %254 = vmatpush.msra.mxu1 %v237_v32  ;;  %v333_v32 = vld [vmem:[#allocation8 + $0x20] sm:$0xff] }
  0x2d   :  { %158 = vmatpush.msra.mxu0 %v131_v11 }
  0x2e   :  { %255 = vmatpush.msra.mxu1 %v236_v34 }
  0x2f   :  { %159 = vmatpush.msra.mxu0 %v130_v12  ;;  %v344_v12 = vld [vmem:[#allocation8 + $0x78] sm:$0xff] }
  0x30   :  { %256 = vmatpush.msra.mxu1 %v235_v35  ;;  %349 = vmatpush.msra.mxu2 %v344_v12 }
  0x31   :  { %160 = vmatpush.msra.mxu0 %v129_v13 }
  0x32   :  { %257 = vmatpush.msra.mxu1 %v234_v36  ;;  %v331_v36 = vld [vmem:[#allocation8 + $0x10] sm:$0xff] }
  0x33   :  { %161 = vmatpush.msra.mxu0 %v128_v14 }
  0x34   :  { %258 = vmatpush.msra.mxu1 %v233_v37 }
  0x35   :  { %162 = vmatpush.msra.mxu0 %v127_v15  ;;  %v343_v15 = vld [vmem:[#allocation8 + $0x70] sm:$0xff] }
  0x36   :  { %163 = vmatmul.f32.vlgmr.msra.gmra.mxu0 %v111_v16  ;;  %259 = vmatpush.msra.mxu1 %v232_v39  ;;  %v329_v39 = vld [vmem:[#allocation8] sm:$0xff] }
  0x37   :  { %350 = vmatpush.msra.mxu2 %v343_v15 }
  0x38   :  { %260 = vmatpush.msra.mxu1 %v231_v40 }
  0x3a   :  { %261 = vmatpush.msra.mxu1 %v230_v41 }
  0x3c   :  { %262 = vmatpush.msra.mxu1 %v229_v43 }
  0x3e   :  { %166 = vmatmul.f32.gmra.mxu0 %v112_v17  ;;  %263 = vmatpush.msra.mxu1 %v228_v44  ;;  %v342_v17 = vld [vmem:[#allocation8 + $0x68] sm:$0xff] }
  0x3f   :  { %351 = vmatpush.msra.mxu2 %v342_v17  ;;  %v444_v17 = vld [vmem:[#allocation10 + $0x70] sm:$0xff] }
  0x46   :  { %169 = vmatmul.f32.gmra.mxu0 %v113_v18  ;;  %v341_v18 = vld [vmem:[#allocation8 + $0x60] sm:$0xff] }
  0x47   :  { %352 = vmatpush.msra.mxu2 %v341_v18 }
  0x4e   :  { %172 = vmatmul.f32.gmra.mxu0 %v114_v19  ;;  %v340_v19 = vld [vmem:[#allocation8 + $0x58] sm:$0xff] }
  0x4f   :  { %353 = vmatpush.msra.mxu2 %v340_v19 }
  0x56   :  { %175 = vmatmul.f32.gmra.mxu0 %v115_v20 }
  0x5e   :  { %178 = vmatmul.f32.gmra.mxu0 %v116_v21 }
  0x66   :  { %181 = vmatmul.f32.gmra.mxu0 %v117_v22  ;;  %v339_v22 = vld [vmem:[#allocation8 + $0x50] sm:$0xff] }
  0x67   :  { %354 = vmatpush.msra.mxu2 %v339_v22  ;;  %v442_v22 = vld [vmem:[#allocation10 + $0x60] sm:$0xff] }
  0x6e   :  { %184 = vmatmul.f32.gmra.mxu0 %v118_v23 }
  0x76   :  { %187 = vmatmul.f32.gmra.mxu0 %v119_v24  ;;  %v338_v24 = vld [vmem:[#allocation8 + $0x48] sm:$0xff] }
  0x77   :  { %355 = vmatpush.msra.mxu2 %v338_v24  ;;  %v440_v24 = vld [vmem:[#allocation10 + $0x50] sm:$0xff] }
  0x79   :  { %356 = vmatpush.msra.mxu2 %v337_v25 }
  0x7b   :  { %357 = vmatpush.msra.mxu2 %v336_v26 }
  0x7d   :  { %358 = vmatpush.msra.mxu2 %v335_v29  ;;  %v438_v29 = vld [vmem:[#allocation10 + $0x40] sm:$0xff] }
  0x7e   :  { %190 = vmatmul.f32.gmra.mxu0 %v120_v28 }
  0x7f   :  { %359 = vmatpush.msra.mxu2 %v334_v31  ;;  %v436_v31 = vld [vmem:[#allocation10 + $0x30] sm:$0xff] }
  0x81   :  { %360 = vmatpush.msra.mxu2 %v333_v32  ;;  %v435_v32 = vld [vmem:[#allocation10 + $0x28] sm:$0xff] }
  0x86   :  { %193 = vmatmul.f32.gmra.mxu0 %v121_v33  ;;  %v332_v33 = vld [vmem:[#allocation8 + $0x18] sm:$0xff] }
  0x87   :  { %361 = vmatpush.msra.mxu2 %v332_v33 }
  0x89   :  { %362 = vmatpush.msra.mxu2 %v331_v36 }
  0x8e   :  { %196 = vmatmul.f32.gmra.mxu0 %v122_v38  ;;  %v330_v38 = vld [vmem:[#allocation8 + $0x8] sm:$0xff] }
  0x8f   :  { %363 = vmatpush.msra.mxu2 %v330_v38  ;;  %v432_v38 = vld [vmem:[#allocation10 + $0x10] sm:$0xff] }
  0x91   :  { %364 = vmatpush.msra.mxu2 %v329_v39 }
  0x96   :  { %199 = vmatmul.f32.gmra.mxu0 %v123_v42 }
  0x9e   :  { %202 = vmatmul.f32.gmra.mxu0 %v124_v45 }
  0xa6   :  { %205 = vmatmul.f32.gmra.mxu0 %v125_v46 }
  0xae   :  { %208 = vmatmul.f32.gmra.mxu0 %v126_v47 }
  0xb3   :  { %v164_v49 = vpop.f32.mrf.mxu0 }
  0xb4   :  { %v165_v50 = vadd.f32 %v1191_v48, %v164_v49 }
  0xb6   :  { %v212_v51 = vmax.f32 %v165_v50, 0.0  ;;  %v1212_v50 = vld [vmem:[%s1264_s4] ss:$0 sm:$0xff] }
  0xb8   :  { %264 = vmatmul.f32.vlgmr.msra.gmra.mxu1 %v212_v51 }
  0xbb   :  { %v167_v52 = vpop.f32.mrf.mxu0 }
  0xbc   :  { %v168_v53 = vadd.f32 %v1191_v48, %v167_v52 }
  0xbe   :  { %v213_v54 = vmax.f32 %v168_v53, 0.0 }
  0xc0   :  { %267 = vmatmul.f32.gmra.mxu1 %v213_v54 }
  0xc3   :  { %v170_v55 = vpop.f32.mrf.mxu0 }
  0xc4   :  { %v171_v56 = vadd.f32 %v1191_v48, %v170_v55 }
  0xc6   :  { %v214_v57 = vmax.f32 %v171_v56, 0.0 }
  0xc8   :  { %270 = vmatmul.f32.gmra.mxu1 %v214_v57 }
  0xcb   :  { %v173_v58 = vpop.f32.mrf.mxu0 }
  0xcc   :  { %v174_v59 = vadd.f32 %v1191_v48, %v173_v58 }
  0xce   :  { %v215_v60 = vmax.f32 %v174_v59, 0.0 }
  0xd0   :  { %273 = vmatmul.f32.gmra.mxu1 %v215_v60 }
  0xd3   :  { %v176_v61 = vpop.f32.mrf.mxu0 }
  0xd4   :  { %v177_v62 = vadd.f32 %v1191_v48, %v176_v61 }
  0xd6   :  { %v216_v63 = vmax.f32 %v177_v62, 0.0 }
  0xd8   :  { %276 = vmatmul.f32.gmra.mxu1 %v216_v63 }
  0xdb   :  { %v179_v0 = vpop.f32.mrf.mxu0 }
  0xdc   :  { %v180_v1 = vadd.f32 %v1191_v48, %v179_v0 }
  0xde   :  { %v217_v2 = vmax.f32 %v180_v1, 0.0 }
  0xe0   :  { %279 = vmatmul.f32.gmra.mxu1 %v217_v2 }
  0xe3   :  { %v182_v3 = vpop.f32.mrf.mxu0 }
  0xe4   :  { %v183_v4 = vadd.f32 %v1191_v48, %v182_v3 }
  0xe6   :  { %v218_v5 = vmax.f32 %v183_v4, 0.0 }
  0xe8   :  { %282 = vmatmul.f32.gmra.mxu1 %v218_v5 }
  0xeb   :  { %v185_v6 = vpop.f32.mrf.mxu0 }
  0xec   :  { %v186_v7 = vadd.f32 %v1191_v48, %v185_v6 }
  0xee   :  { %v219_v8 = vmax.f32 %v186_v7, 0.0 }
  0xf0   :  { %285 = vmatmul.f32.gmra.mxu1 %v219_v8 }
  0xf3   :  { %v188_v9 = vpop.f32.mrf.mxu0 }
  0xf4   :  { %v189_v10 = vadd.f32 %v1191_v48, %v188_v9 }
  0xf6   :  { %v220_v11 = vmax.f32 %v189_v10, 0.0 }
  0xf8   :  { %288 = vmatmul.f32.gmra.mxu1 %v220_v11 }
  0xfb   :  { %v191_v13 = vpop.f32.mrf.mxu0 }
  0xfc   :  { %v192_v14 = vadd.f32 %v1191_v48, %v191_v13 }
  0xfe   :  { %v221_v16 = vmax.f32 %v192_v14, 0.0 }
 0x100   :  { %291 = vmatmul.f32.gmra.mxu1 %v221_v16  ;;  %v445_v16 = vld [vmem:[#allocation10 + $0x78] sm:$0xff] }
 0x101   :  { %450 = vmatpush.msra.mxu3 %v445_v16 }
 0x103   :  { %v194_v20 = vpop.f32.mrf.mxu0  ;;  %451 = vmatpush.msra.mxu3 %v444_v17 }
 0x104   :  { %v195_v21 = vadd.f32 %v1191_v48, %v194_v20  ;;  %v443_v20 = vld [vmem:[#allocation10 + $0x68] sm:$0xff] }
 0x105   :  { %452 = vmatpush.msra.mxu3 %v443_v20 }
 0x106   :  { %v222_v23 = vmax.f32 %v195_v21, 0.0 }
 0x107   :  { %453 = vmatpush.msra.mxu3 %v442_v22 }
 0x108   :  { %294 = vmatmul.f32.gmra.mxu1 %v222_v23  ;;  %v441_v23 = vld [vmem:[#allocation10 + $0x58] sm:$0xff] }
 0x109   :  { %454 = vmatpush.msra.mxu3 %v441_v23 }
 0x10b   :  { %v197_v27 = vpop.f32.mrf.mxu0  ;;  %455 = vmatpush.msra.mxu3 %v440_v24 }
 0x10c   :  { %v198_v28 = vadd.f32 %v1191_v48, %v197_v27  ;;  %v439_v27 = vld [vmem:[#allocation10 + $0x48] sm:$0xff] }
 0x10d   :  { %456 = vmatpush.msra.mxu3 %v439_v27 }
 0x10e   :  { %v223_v30 = vmax.f32 %v198_v28, 0.0 }
 0x10f   :  { %457 = vmatpush.msra.mxu3 %v438_v29 }
 0x110   :  { %297 = vmatmul.f32.gmra.mxu1 %v223_v30  ;;  %v437_v30 = vld [vmem:[#allocation10 + $0x38] sm:$0xff] }
 0x111   :  { %458 = vmatpush.msra.mxu3 %v437_v30 }
 0x113   :  { %v200_v34 = vpop.f32.mrf.mxu0  ;;  %459 = vmatpush.msra.mxu3 %v436_v31 }
 0x114   :  { %v201_v35 = vadd.f32 %v1191_v48, %v200_v34 }
 0x115   :  { %460 = vmatpush.msra.mxu3 %v435_v32 }
 0x116   :  { %v224_v37 = vmax.f32 %v201_v35, 0.0  ;;  %v434_v35 = vld [vmem:[#allocation10 + $0x20] sm:$0xff] }
 0x117   :  { %461 = vmatpush.msra.mxu3 %v434_v35  ;;  %v1236_v35 = vld [vmem:[%s1268_s8] ss:$0 sm:$0xff]  ;;  %s1107_s8 = smov [#allocation11]  }
 0x118   :  { %300 = vmatmul.f32.gmra.mxu1 %v224_v37  ;;  %v433_v37 = vld [vmem:[#allocation10 + $0x18] sm:$0xff]  ;;  %s839_s15 = sshll.u32 %s1107_s8, 4  ;;  %s840_s15 = int_to_ptr.vmem [resolvable:$true] %s839_s15 }
 0x119   :  { %462 = vmatpush.msra.mxu3 %v433_v37 }
 0x11b   :  { %v203_v40 = vpop.f32.mrf.mxu0  ;;  %463 = vmatpush.msra.mxu3 %v432_v38 }
 0x11c   :  { %v204_v41 = vadd.f32 %v1191_v48, %v203_v40 }
 0x11e   :  { %v225_v42 = vmax.f32 %v204_v41, 0.0  ;;  %v431_v41 = vld [vmem:[#allocation10 + $0x8] sm:$0xff] }
 0x11f   :  { %464 = vmatpush.msra.mxu3 %v431_v41 }
 0x120   :  { %303 = vmatmul.f32.gmra.mxu1 %v225_v42 }
 0x123   :  { %v206_v43 = vpop.f32.mrf.mxu0 }
 0x124   :  { %v207_v44 = vadd.f32 %v1191_v48, %v206_v43  ;;  %v430_v43 = vld [vmem:[#allocation10] sm:$0xff] }
 0x125   :  { %465 = vmatpush.msra.mxu3 %v430_v43 }
 0x126   :  { %v226_v45 = vmax.f32 %v207_v44, 0.0 }
 0x128   :  { %306 = vmatmul.f32.gmra.mxu1 %v226_v45 }
 0x12b   :  { %v209_v46 = vpop.f32.mrf.mxu0 }
 0x12c   :  { %v210_v47 = vadd.f32 %v1191_v48, %v209_v46 }
 0x12e   :  { %v227_v49 = vmax.f32 %v210_v47, 0.0 }
 0x130   :  { %309 = vmatmul.f32.gmra.mxu1 %v227_v49 }
 0x135   :  { %v265_v51 = vpop.f32.mrf.mxu1 }
 0x136   :  { %v266_v52 = vadd.f32 %v1212_v50, %v265_v51 }
 0x138   :  { %v313_v53 = vmax.f32 %v266_v52, 0.0  ;;  %v882_v52 = vld [vmem:[%s1266_s6] ss:$0 sm:$0xff] }
 0x13a   :  { %365 = vmatmul.f32.vlgmr.msra.gmra.mxu2 %v313_v53 }
 0x13d   :  { %v268_v54 = vpop.f32.mrf.mxu1 }
 0x13e   :  { %v269_v55 = vadd.f32 %v1212_v50, %v268_v54 }
 0x140   :  { %v314_v56 = vmax.f32 %v269_v55, 0.0 }
 0x142   :  { %368 = vmatmul.f32.gmra.mxu2 %v314_v56 }
 0x145   :  { %v271_v57 = vpop.f32.mrf.mxu1 }
 0x146   :  { %v272_v48 = vadd.f32 %v1212_v50, %v271_v57 }
 0x148   :  { %v315_v58 = vmax.f32 %v272_v48, 0.0 }
 0x14a   :  { %371 = vmatmul.f32.gmra.mxu2 %v315_v58 }
 0x14d   :  { %v274_v59 = vpop.f32.mrf.mxu1 }
 0x14e   :  { %v275_v60 = vadd.f32 %v1212_v50, %v274_v59 }
 0x150   :  { %v316_v61 = vmax.f32 %v275_v60, 0.0 }
 0x152   :  { %374 = vmatmul.f32.gmra.mxu2 %v316_v61 }
 0x155   :  { %v277_v62 = vpop.f32.mrf.mxu1 }
 0x156   :  { %v278_v63 = vadd.f32 %v1212_v50, %v277_v62 }
 0x158   :  { %v317_v0 = vmax.f32 %v278_v63, 0.0 }
 0x15a   :  { %377 = vmatmul.f32.gmra.mxu2 %v317_v0 }
 0x15d   :  { %v280_v1 = vpop.f32.mrf.mxu1 }
 0x15e   :  { %v281_v2 = vadd.f32 %v1212_v50, %v280_v1 }
 0x160   :  { %v318_v3 = vmax.f32 %v281_v2, 0.0 }
 0x162   :  { %380 = vmatmul.f32.gmra.mxu2 %v318_v3 }
 0x165   :  { %v283_v4 = vpop.f32.mrf.mxu1 }
 0x166   :  { %v284_v5 = vadd.f32 %v1212_v50, %v283_v4 }
 0x168   :  { %v319_v6 = vmax.f32 %v284_v5, 0.0 }
 0x16a   :  { %383 = vmatmul.f32.gmra.mxu2 %v319_v6 }
 0x16d   :  { %v286_v7 = vpop.f32.mrf.mxu1 }
 0x16e   :  { %v287_v8 = vadd.f32 %v1212_v50, %v286_v7 }
 0x170   :  { %v320_v9 = vmax.f32 %v287_v8, 0.0 }
 0x172   :  { %386 = vmatmul.f32.gmra.mxu2 %v320_v9 }
 0x175   :  { %v289_v10 = vpop.f32.mrf.mxu1 }
 0x176   :  { %v290_v11 = vadd.f32 %v1212_v50, %v289_v10 }
 0x178   :  { %v321_v12 = vmax.f32 %v290_v11, 0.0 }
 0x17a   :  { %389 = vmatmul.f32.gmra.mxu2 %v321_v12 }
 0x17d   :  { %v292_v13 = vpop.f32.mrf.mxu1 }
 0x17e   :  { %v293_v14 = vadd.f32 %v1212_v50, %v292_v13 }
 0x180   :  { %v322_v15 = vmax.f32 %v293_v14, 0.0 }
 0x182   :  { %392 = vmatmul.f32.gmra.mxu2 %v322_v15 }
 0x185   :  { %v295_v18 = vpop.f32.mrf.mxu1 }
 0x186   :  { %v296_v19 = vadd.f32 %v1212_v50, %v295_v18 }
 0x188   :  { %v323_v21 = vmax.f32 %v296_v19, 0.0 }
 0x18a   :  { %395 = vmatmul.f32.gmra.mxu2 %v323_v21 }
 0x18d   :  { %v298_v25 = vpop.f32.mrf.mxu1 }
 0x18e   :  { %v299_v26 = vadd.f32 %v1212_v50, %v298_v25 }
 0x190   :  { %v324_v28 = vmax.f32 %v299_v26, 0.0 }
 0x192   :  { %398 = vmatmul.f32.gmra.mxu2 %v324_v28 }
 0x195   :  { %v301_v33 = vpop.f32.mrf.mxu1 }
 0x196   :  { %v302_v34 = vadd.f32 %v1212_v50, %v301_v33 }
 0x198   :  { %v325_v36 = vmax.f32 %v302_v34, 0.0 }
 0x19a   :  { %401 = vmatmul.f32.gmra.mxu2 %v325_v36 }
 0x19d   :  { %v304_v39 = vpop.f32.mrf.mxu1 }
 0x19e   :  { %v305_v40 = vadd.f32 %v1212_v50, %v304_v39 }
 0x1a0   :  { %v326_v42 = vmax.f32 %v305_v40, 0.0 }
 0x1a2   :  { %404 = vmatmul.f32.gmra.mxu2 %v326_v42 }
 0x1a5   :  { %v307_v44 = vpop.f32.mrf.mxu1 }
 0x1a6   :  { %v308_v45 = vadd.f32 %v1212_v50, %v307_v44 }
 0x1a8   :  { %v327_v46 = vmax.f32 %v308_v45, 0.0 }
 0x1aa   :  { %407 = vmatmul.f32.gmra.mxu2 %v327_v46 }
 0x1ad   :  { %v310_v47 = vpop.f32.mrf.mxu1 }
 0x1ae   :  { %v311_v49 = vadd.f32 %v1212_v50, %v310_v47 }
 0x1b0   :  { %v328_v51 = vmax.f32 %v311_v49, 0.0 }
 0x1b2   :  { %410 = vmatmul.f32.gmra.mxu2 %v328_v51 }
 0x1bd   :  { %v366_v53 = vpop.f32.mrf.mxu2 }
 0x1be   :  { %v367_v54 = vadd.f32 %v882_v52, %v366_v53 }
 0x1c0   :  { %v414_v55 = vmax.f32 %v367_v54, 0.0 }
 0x1c2   :  { %466 = vmatmul.f32.vlgmr.msra.gmra.mxu3 %v414_v55 }
 0x1c5   :  { %v369_v56 = vpop.f32.mrf.mxu2 }
 0x1c6   :  { %v370_v57 = vadd.f32 %v882_v52, %v369_v56 }
 0x1c8   :  { %v415_v48 = vmax.f32 %v370_v57, 0.0 }
 0x1ca   :  { %469 = vmatmul.f32.gmra.mxu3 %v415_v48 }
 0x1cd   :  { %v372_v58 = vpop.f32.mrf.mxu2 }
 0x1ce   :  { %v373_v59 = vadd.f32 %v882_v52, %v372_v58 }
 0x1d0   :  { %v416_v60 = vmax.f32 %v373_v59, 0.0 }
 0x1d2   :  { %472 = vmatmul.f32.gmra.mxu3 %v416_v60 }
 0x1d5   :  { %v375_v61 = vpop.f32.mrf.mxu2 }
 0x1d6   :  { %v376_v50 = vadd.f32 %v882_v52, %v375_v61 }
 0x1d8   :  { %v417_v62 = vmax.f32 %v376_v50, 0.0 }
 0x1da   :  { %475 = vmatmul.f32.gmra.mxu3 %v417_v62 }
 0x1dd   :  { %v378_v63 = vpop.f32.mrf.mxu2 }
 0x1de   :  { %v379_v0 = vadd.f32 %v882_v52, %v378_v63 }
 0x1e0   :  { %v418_v1 = vmax.f32 %v379_v0, 0.0 }
 0x1e2   :  { %478 = vmatmul.f32.gmra.mxu3 %v418_v1 }
 0x1e5   :  { %v381_v2 = vpop.f32.mrf.mxu2 }
 0x1e6   :  { %v382_v3 = vadd.f32 %v882_v52, %v381_v2 }
 0x1e8   :  { %v419_v4 = vmax.f32 %v382_v3, 0.0 }
 0x1ea   :  { %481 = vmatmul.f32.gmra.mxu3 %v419_v4 }
 0x1ed   :  { %v384_v5 = vpop.f32.mrf.mxu2 }
 0x1ee   :  { %v385_v6 = vadd.f32 %v882_v52, %v384_v5 }
 0x1f0   :  { %v420_v7 = vmax.f32 %v385_v6, 0.0 }
 0x1f2   :  { %484 = vmatmul.f32.gmra.mxu3 %v420_v7 }
 0x1f5   :  { %v387_v8 = vpop.f32.mrf.mxu2 }
 0x1f6   :  { %v388_v9 = vadd.f32 %v882_v52, %v387_v8 }
 0x1f8   :  { %v421_v10 = vmax.f32 %v388_v9, 0.0 }
 0x1fa   :  { %487 = vmatmul.f32.gmra.mxu3 %v421_v10 }
 0x1fd   :  { %v390_v11 = vpop.f32.mrf.mxu2 }
 0x1fe   :  { %v391_v12 = vadd.f32 %v882_v52, %v390_v11 }
 0x200   :  { %v422_v13 = vmax.f32 %v391_v12, 0.0 }
 0x202   :  { %490 = vmatmul.f32.gmra.mxu3 %v422_v13 }
 0x205   :  { %v393_v14 = vpop.f32.mrf.mxu2 }
 0x206   :  { %v394_v15 = vadd.f32 %v882_v52, %v393_v14 }
 0x208   :  { %v423_v16 = vmax.f32 %v394_v15, 0.0 }
 0x20a   :  { %493 = vmatmul.f32.gmra.mxu3 %v423_v16 }
 0x20d   :  { %v396_v17 = vpop.f32.mrf.mxu2 }
 0x20e   :  { %v397_v18 = vadd.f32 %v882_v52, %v396_v17 }
 0x210   :  { %v424_v19 = vmax.f32 %v397_v18, 0.0 }
 0x212   :  { %496 = vmatmul.f32.gmra.mxu3 %v424_v19 }
 0x215   :  { %v399_v20 = vpop.f32.mrf.mxu2 }
 0x216   :  { %v400_v21 = vadd.f32 %v882_v52, %v399_v20 }
 0x218   :  { %v425_v22 = vmax.f32 %v400_v21, 0.0 }
 0x21a   :  { %499 = vmatmul.f32.gmra.mxu3 %v425_v22 }
 0x21d   :  { %v402_v23 = vpop.f32.mrf.mxu2 }
 0x21e   :  { %v403_v24 = vadd.f32 %v882_v52, %v402_v23 }
 0x220   :  { %v426_v25 = vmax.f32 %v403_v24, 0.0 }
 0x222   :  { %502 = vmatmul.f32.gmra.mxu3 %v426_v25 }
 0x225   :  { %v405_v26 = vpop.f32.mrf.mxu2 }
 0x226   :  { %v406_v27 = vadd.f32 %v882_v52, %v405_v26 }
 0x228   :  { %v427_v28 = vmax.f32 %v406_v27, 0.0 }
 0x22a   :  { %505 = vmatmul.f32.gmra.mxu3 %v427_v28 }
 0x22d   :  { %v408_v29 = vpop.f32.mrf.mxu2 }
 0x22e   :  { %v409_v30 = vadd.f32 %v882_v52, %v408_v29 }
 0x230   :  { %v428_v31 = vmax.f32 %v409_v30, 0.0 }
 0x232   :  { %508 = vmatmul.f32.gmra.mxu3 %v428_v31 }
 0x235   :  { %v411_v32 = vpop.f32.mrf.mxu2 }
 0x236   :  { %v412_v33 = vadd.f32 %v882_v52, %v411_v32 }
 0x238   :  { %v429_v34 = vmax.f32 %v412_v33, 0.0 }
 0x23a   :  { %511 = vmatmul.f32.gmra.mxu3 %v429_v34 }
 0x245   :  { %v467_v36 = vpop.f32.mrf.mxu3 }
 0x246   :  { %v468_v37 = vadd.f32 %v1236_v35, %v467_v36 }
 0x248   :  { %v856_v38 = vmul.f32 -1.442695, %v468_v37 }
 0x24a   :  { %884 = vpow2.f32 %v856_v38 }
 0x24d   :  { %v470_v39 = vpop.f32.mrf.mxu3 }
 0x24e   :  { %v471_v40 = vadd.f32 %v1236_v35, %v470_v39 }
 0x250   :  { %v885_v41 = vpop.eup %884  ;;  %v857_v42 = vmul.f32 -1.442695, %v471_v40 }
 0x251   :  { %v563_v43 = vadd.f32 1.0, %v885_v41 }
 0x252   :  { %886 = vpow2.f32 %v857_v42 }
 0x253   :  { %888 = vrcp.f32 %v563_v43  ;;  %v590_v54 = vand.u32 2147483648, %v563_v43  ;;  %v588_v57 = vand.u32 2147483647, %v563_v43  ;;  %vm584_vm1 = vweird.f32 %v563_v43 }
 0x255   :  { %v473_v44 = vpop.f32.mrf.mxu3  ;;  %v591_v50 = vor.u32 1.1754944e-38, %v590_v54  ;;  %vm589_vm3 = vcmp.eq.f32.partialorder %v588_v57, 8.507059e+37 }
 0x256   :  { %v474_v45 = vadd.f32 %v1236_v35, %v473_v44 }
 0x258   :  { %v887_v46 = vpop.eup %886  ;;  %v858_v47 = vmul.f32 -1.442695, %v474_v45 }
 0x259   :  { %v889_v49 = vpop.eup %888  ;;  %v564_v51 = vadd.f32 1.0, %v887_v46 }
 0x25a   :  { %v580_v52 = vmul.f32 %v889_v49, %v563_v43  ;;  %890 = vpow2.f32 %v858_v47  ;;  %vm585_vm0 = vweird.f32 %v889_v49 }
 0x25b   :  { %892 = vrcp.f32 %v564_v51  ;;  %vm586_vm2 = vmor %vm584_vm1, %vm585_vm0  ;;  %v605_v3 = vand.u32 2147483648, %v564_v51  ;;  %v603_v6 = vand.u32 2147483647, %v564_v51  ;;  %vm599_vm5 = vweird.f32 %v564_v51 }
 0x25c   :  { %v581_v53 = vsub.f32 1.0, %v580_v52 }
 0x25d   :  { %v476_v55 = vpop.f32.mrf.mxu3  ;;  %v606_v12 = vor.u32 1.1754944e-38, %v605_v3  ;;  %vm604_vm7 = vcmp.eq.f32.partialorder %v603_v6, 8.507059e+37 }
 0x25e   :  { %v582_v56 = vmul.f32 %v889_v49, %v581_v53  ;;  %v477_v48 = vadd.f32 %v1236_v35, %v476_v55 }
 0x260   :  { %v891_v58 = vpop.eup %890  ;;  %v583_v59 = vadd.f32 %v889_v49, %v582_v56  ;;  %v859_v60 = vmul.f32 -1.442695, %v477_v48 }
 0x261   :  { %v893_v61 = vpop.eup %892  ;;  %v565_v62 = vadd.f32 1.0, %v891_v58 }
 0x262   :  { %v587_v63 = vsel %vm586_vm2, %v889_v49, %v583_v59  ;;  %v595_v0 = vmul.f32 %v893_v61, %v564_v51  ;;  %894 = vpow2.f32 %v859_v60  ;;  %vm600_vm4 = vweird.f32 %v893_v61 }
 0x263   :  { %v592_v1 = vsel %vm589_vm3, %v591_v50, %v587_v63  ;;  %896 = vrcp.f32 %v565_v62  ;;  %vm601_vm6 = vmor %vm599_vm5, %vm600_vm4  ;;  %v620_v18 = vand.u32 2147483648, %v565_v62  ;;  %v618_v21 = vand.u32 2147483647, %v565_v62 }
 0x264   :  { %819 = vst [vmem:[#allocation11] sm:$0xff] %v592_v1  ;;  %v596_v2 = vsub.f32 1.0, %v595_v0  ;;  %vm614_vm9 = vweird.f32 %v565_v62 }
 0x265   :  { %v479_v4 = vpop.f32.mrf.mxu3  ;;  %v621_v27 = vor.u32 1.1754944e-38, %v620_v18  ;;  %vm619_vm11 = vcmp.eq.f32.partialorder %v618_v21, 8.507059e+37 }
 0x266   :  { %v597_v5 = vmul.f32 %v893_v61, %v596_v2  ;;  %v480_v7 = vadd.f32 %v1236_v35, %v479_v4 }
 0x268   :  { %v895_v8 = vpop.eup %894  ;;  %v598_v9 = vadd.f32 %v893_v61, %v597_v5  ;;  %v860_v10 = vmul.f32 -1.442695, %v480_v7 }
 0x269   :  { %v897_v11 = vpop.eup %896  ;;  %v566_v13 = vadd.f32 1.0, %v895_v8 }
 0x26a   :  { %v602_v14 = vsel %vm601_vm6, %v893_v61, %v598_v9  ;;  %v610_v15 = vmul.f32 %v897_v11, %v565_v62  ;;  %898 = vpow2.f32 %v860_v10  ;;  %vm615_vm8 = vweird.f32 %v897_v11 }
 0x26b   :  { %v607_v16 = vsel %vm604_vm7, %v606_v12, %v602_v14  ;;  %900 = vrcp.f32 %v566_v13  ;;  %vm616_vm10 = vmor %vm614_vm9, %vm615_vm8  ;;  %v635_v33 = vand.u32 2147483648, %v566_v13  ;;  %v633_v37 = vand.u32 2147483647, %v566_v13 }
 0x26c   :  { %820 = vst [vmem:[#allocation11 + $0x8] sm:$0xff] %v607_v16  ;;  %v611_v17 = vsub.f32 1.0, %v610_v15  ;;  %vm629_vm13 = vweird.f32 %v566_v13 }
 0x26d   :  { %v482_v19 = vpop.f32.mrf.mxu3  ;;  %v636_v43 = vor.u32 1.1754944e-38, %v635_v33  ;;  %vm634_vm15 = vcmp.eq.f32.partialorder %v633_v37, 8.507059e+37 }
 0x26e   :  { %v612_v20 = vmul.f32 %v897_v11, %v611_v17  ;;  %v483_v22 = vadd.f32 %v1236_v35, %v482_v19 }
 0x270   :  { %v899_v23 = vpop.eup %898  ;;  %v613_v24 = vadd.f32 %v897_v11, %v612_v20  ;;  %v861_v25 = vmul.f32 -1.442695, %v483_v22 }
 0x271   :  { %v901_v26 = vpop.eup %900  ;;  %v567_v28 = vadd.f32 1.0, %v899_v23 }
 0x272   :  { %v617_v29 = vsel %vm616_vm10, %v897_v11, %v613_v24  ;;  %v625_v30 = vmul.f32 %v901_v26, %v566_v13  ;;  %902 = vpow2.f32 %v861_v25  ;;  %vm630_vm12 = vweird.f32 %v901_v26 }
 0x273   :  { %v622_v31 = vsel %vm619_vm11, %v621_v27, %v617_v29  ;;  %904 = vrcp.f32 %v567_v28  ;;  %vm631_vm14 = vmor %vm629_vm13, %vm630_vm12  ;;  %v650_v51 = vand.u32 2147483648, %v567_v28  ;;  %v648_v54 = vand.u32 2147483647, %v567_v28 }
 0x274   :  { %821 = vst [vmem:[#allocation11 + $0x10] sm:$0xff] %v622_v31  ;;  %v626_v32 = vsub.f32 1.0, %v625_v30  ;;  %vm644_vm1 = vweird.f32 %v567_v28 }
 0x275   :  { %v485_v34 = vpop.f32.mrf.mxu3  ;;  %v651_v59 = vor.u32 1.1754944e-38, %v650_v51  ;;  %vm649_vm3 = vcmp.eq.f32.partialorder %v648_v54, 8.507059e+37 }
 0x276   :  { %v627_v36 = vmul.f32 %v901_v26, %v626_v32  ;;  %v486_v38 = vadd.f32 %v1236_v35, %v485_v34 }
 0x278   :  { %v903_v39 = vpop.eup %902  ;;  %v628_v40 = vadd.f32 %v901_v26, %v627_v36  ;;  %v862_v41 = vmul.f32 -1.442695, %v486_v38 }
 0x279   :  { %v905_v42 = vpop.eup %904  ;;  %v568_v44 = vadd.f32 1.0, %v903_v39 }
 0x27a   :  { %v632_v45 = vsel %vm631_vm14, %v901_v26, %v628_v40  ;;  %v640_v46 = vmul.f32 %v905_v42, %v567_v28  ;;  %906 = vpow2.f32 %v862_v41  ;;  %vm645_vm0 = vweird.f32 %v905_v42 }
 0x27b   :  { %v637_v47 = vsel %vm634_vm15, %v636_v43, %v632_v45  ;;  %908 = vrcp.f32 %v568_v44  ;;  %vm646_vm2 = vmor %vm644_vm1, %vm645_vm0  ;;  %v665_v0 = vand.u32 2147483648, %v568_v44  ;;  %v663_v3 = vand.u32 2147483647, %v568_v44 }
 0x27c   :  { %822 = vst [vmem:[#allocation11 + $0x18] sm:$0xff] %v637_v47  ;;  %v641_v49 = vsub.f32 1.0, %v640_v46  ;;  %vm659_vm5 = vweird.f32 %v568_v44 }
 0x27d   :  { %v488_v52 = vpop.f32.mrf.mxu3  ;;  %v666_v9 = vor.u32 1.1754944e-38, %v665_v0  ;;  %vm664_vm7 = vcmp.eq.f32.partialorder %v663_v3, 8.507059e+37 }
 0x27e   :  { %v642_v53 = vmul.f32 %v905_v42, %v641_v49  ;;  %v489_v55 = vadd.f32 %v1236_v35, %v488_v52 }
 0x280   :  { %v907_v56 = vpop.eup %906  ;;  %v643_v57 = vadd.f32 %v905_v42, %v642_v53  ;;  %v863_v48 = vmul.f32 -1.442695, %v489_v55 }
 0x281   :  { %v909_v58 = vpop.eup %908  ;;  %v569_v60 = vadd.f32 1.0, %v907_v56 }
 0x282   :  { %v647_v61 = vsel %vm646_vm2, %v905_v42, %v643_v57  ;;  %v655_v50 = vmul.f32 %v909_v58, %v568_v44  ;;  %910 = vpow2.f32 %v863_v48  ;;  %vm660_vm4 = vweird.f32 %v909_v58 }
 0x283   :  { %v652_v62 = vsel %vm649_vm3, %v651_v59, %v647_v61  ;;  %912 = vrcp.f32 %v569_v60  ;;  %vm661_vm6 = vmor %vm659_vm5, %vm660_vm4  ;;  %v680_v15 = vand.u32 2147483648, %v569_v60  ;;  %v678_v18 = vand.u32 2147483647, %v569_v60 }
 0x284   :  { %823 = vst [vmem:[#allocation11 + $0x20] sm:$0xff] %v652_v62  ;;  %v656_v63 = vsub.f32 1.0, %v655_v50  ;;  %vm674_vm9 = vweird.f32 %v569_v60 }
 0x285   :  { %v491_v1 = vpop.f32.mrf.mxu3  ;;  %v681_v24 = vor.u32 1.1754944e-38, %v680_v15  ;;  %vm679_vm11 = vcmp.eq.f32.partialorder %v678_v18, 8.507059e+37 }
 0x286   :  { %v657_v2 = vmul.f32 %v909_v58, %v656_v63  ;;  %v492_v4 = vadd.f32 %v1236_v35, %v491_v1 }
 0x288   :  { %v911_v5 = vpop.eup %910  ;;  %v658_v6 = vadd.f32 %v909_v58, %v657_v2  ;;  %v864_v7 = vmul.f32 -1.442695, %v492_v4 }
 0x289   :  { %v913_v8 = vpop.eup %912  ;;  %v570_v10 = vadd.f32 1.0, %v911_v5 }
 0x28a   :  { %v662_v11 = vsel %vm661_vm6, %v909_v58, %v658_v6  ;;  %v670_v12 = vmul.f32 %v913_v8, %v569_v60  ;;  %914 = vpow2.f32 %v864_v7  ;;  %vm675_vm8 = vweird.f32 %v913_v8 }
 0x28b   :  { %v667_v13 = vsel %vm664_vm7, %v666_v9, %v662_v11  ;;  %916 = vrcp.f32 %v570_v10  ;;  %vm676_vm10 = vmor %vm674_vm9, %vm675_vm8  ;;  %v695_v30 = vand.u32 2147483648, %v570_v10  ;;  %v693_v33 = vand.u32 2147483647, %v570_v10 }
 0x28c   :  { %824 = vst [vmem:[#allocation11 + $0x28] sm:$0xff] %v667_v13  ;;  %v671_v14 = vsub.f32 1.0, %v670_v12  ;;  %vm689_vm13 = vweird.f32 %v570_v10 }
 0x28d   :  { %v494_v16 = vpop.f32.mrf.mxu3  ;;  %v696_v40 = vor.u32 1.1754944e-38, %v695_v30  ;;  %vm694_vm15 = vcmp.eq.f32.partialorder %v693_v33, 8.507059e+37 }
 0x28e   :  { %v672_v17 = vmul.f32 %v913_v8, %v671_v14  ;;  %v495_v19 = vadd.f32 %v1236_v35, %v494_v16 }
 0x290   :  { %v915_v20 = vpop.eup %914  ;;  %v673_v21 = vadd.f32 %v913_v8, %v672_v17  ;;  %v865_v22 = vmul.f32 -1.442695, %v495_v19 }
 0x291   :  { %v917_v23 = vpop.eup %916  ;;  %v571_v25 = vadd.f32 1.0, %v915_v20 }
 0x292   :  { %v677_v26 = vsel %vm676_vm10, %v913_v8, %v673_v21  ;;  %v685_v27 = vmul.f32 %v917_v23, %v570_v10  ;;  %918 = vpow2.f32 %v865_v22  ;;  %vm690_vm12 = vweird.f32 %v917_v23 }
 0x293   :  { %v682_v28 = vsel %vm679_vm11, %v681_v24, %v677_v26  ;;  %920 = vrcp.f32 %v571_v25  ;;  %vm691_vm14 = vmor %vm689_vm13, %vm690_vm12  ;;  %v710_v46 = vand.u32 2147483648, %v571_v25  ;;  %v708_v51 = vand.u32 2147483647, %v571_v25 }
 0x294   :  { %825 = vst [vmem:[#allocation11 + $0x30] sm:$0xff] %v682_v28  ;;  %v686_v29 = vsub.f32 1.0, %v685_v27  ;;  %vm704_vm1 = vweird.f32 %v571_v25 }
 0x295   :  { %v497_v31 = vpop.f32.mrf.mxu3  ;;  %v711_v57 = vor.u32 1.1754944e-38, %v710_v46  ;;  %vm709_vm3 = vcmp.eq.f32.partialorder %v708_v51, 8.507059e+37 }
 0x296   :  { %v687_v32 = vmul.f32 %v917_v23, %v686_v29  ;;  %v498_v34 = vadd.f32 %v1236_v35, %v497_v31 }
 0x298   :  { %v919_v36 = vpop.eup %918  ;;  %v688_v37 = vadd.f32 %v917_v23, %v687_v32  ;;  %v866_v38 = vmul.f32 -1.442695, %v498_v34 }
 0x299   :  { %v921_v39 = vpop.eup %920  ;;  %v572_v41 = vadd.f32 1.0, %v919_v36 }
 0x29a   :  { %v692_v42 = vsel %vm691_vm14, %v917_v23, %v688_v37  ;;  %v700_v43 = vmul.f32 %v921_v39, %v571_v25  ;;  %922 = vpow2.f32 %v866_v38  ;;  %vm705_vm0 = vweird.f32 %v921_v39 }
 0x29b   :  { %v697_v44 = vsel %vm694_vm15, %v696_v40, %v692_v42  ;;  %924 = vrcp.f32 %v572_v41  ;;  %vm706_vm2 = vmor %vm704_vm1, %vm705_vm0  ;;  %v725_v50 = vand.u32 2147483648, %v572_v41  ;;  %v723_v0 = vand.u32 2147483647, %v572_v41 }
 0x29c   :  { %826 = vst [vmem:[#allocation11 + $0x38] sm:$0xff] %v697_v44  ;;  %v701_v45 = vsub.f32 1.0, %v700_v43  ;;  %vm719_vm5 = vweird.f32 %v572_v41 }
 0x29d   :  { %v500_v47 = vpop.f32.mrf.mxu3  ;;  %v726_v6 = vor.u32 1.1754944e-38, %v725_v50  ;;  %vm724_vm7 = vcmp.eq.f32.partialorder %v723_v0, 8.507059e+37 }
 0x29e   :  { %v702_v49 = vmul.f32 %v921_v39, %v701_v45  ;;  %v501_v52 = vadd.f32 %v1236_v35, %v500_v47 }
 0x2a0   :  { %v923_v53 = vpop.eup %922  ;;  %v703_v54 = vadd.f32 %v921_v39, %v702_v49  ;;  %v867_v55 = vmul.f32 -1.442695, %v501_v52 }
 0x2a1   :  { %v925_v56 = vpop.eup %924  ;;  %v573_v48 = vadd.f32 1.0, %v923_v53 }
 0x2a2   :  { %v707_v58 = vsel %vm706_vm2, %v921_v39, %v703_v54  ;;  %v715_v59 = vmul.f32 %v925_v56, %v572_v41  ;;  %926 = vpow2.f32 %v867_v55  ;;  %vm720_vm4 = vweird.f32 %v925_v56 }
 0x2a3   :  { %v712_v60 = vsel %vm709_vm3, %v711_v57, %v707_v58  ;;  %928 = vrcp.f32 %v573_v48  ;;  %vm721_vm6 = vmor %vm719_vm5, %vm720_vm4  ;;  %v740_v12 = vand.u32 2147483648, %v573_v48  ;;  %v738_v15 = vand.u32 2147483647, %v573_v48 }
 0x2a4   :  { %827 = vst [vmem:[#allocation11 + $0x40] sm:$0xff] %v712_v60  ;;  %v716_v61 = vsub.f32 1.0, %v715_v59  ;;  %vm734_vm9 = vweird.f32 %v573_v48 }
 0x2a5   :  { %v503_v62 = vpop.f32.mrf.mxu3  ;;  %v741_v21 = vor.u32 1.1754944e-38, %v740_v12  ;;  %vm739_vm11 = vcmp.eq.f32.partialorder %v738_v15, 8.507059e+37 }
 0x2a6   :  { %v717_v63 = vmul.f32 %v925_v56, %v716_v61  ;;  %v504_v1 = vadd.f32 %v1236_v35, %v503_v62 }
 0x2a8   :  { %v927_v2 = vpop.eup %926  ;;  %v718_v3 = vadd.f32 %v925_v56, %v717_v63  ;;  %v868_v4 = vmul.f32 -1.442695, %v504_v1 }
 0x2a9   :  { %v929_v5 = vpop.eup %928  ;;  %v574_v7 = vadd.f32 1.0, %v927_v2 }
 0x2aa   :  { %v722_v8 = vsel %vm721_vm6, %v925_v56, %v718_v3  ;;  %v730_v9 = vmul.f32 %v929_v5, %v573_v48  ;;  %930 = vpow2.f32 %v868_v4  ;;  %vm735_vm8 = vweird.f32 %v929_v5 }
 0x2ab   :  { %v727_v10 = vsel %vm724_vm7, %v726_v6, %v722_v8  ;;  %932 = vrcp.f32 %v574_v7  ;;  %vm736_vm10 = vmor %vm734_vm9, %vm735_vm8  ;;  %v755_v27 = vand.u32 2147483648, %v574_v7  ;;  %v753_v30 = vand.u32 2147483647, %v574_v7 }
 0x2ac   :  { %828 = vst [vmem:[#allocation11 + $0x48] sm:$0xff] %v727_v10  ;;  %v731_v11 = vsub.f32 1.0, %v730_v9  ;;  %vm749_vm13 = vweird.f32 %v574_v7 }
 0x2ad   :  { %v506_v13 = vpop.f32.mrf.mxu3  ;;  %v756_v37 = vor.u32 1.1754944e-38, %v755_v27  ;;  %vm754_vm15 = vcmp.eq.f32.partialorder %v753_v30, 8.507059e+37 }
 0x2ae   :  { %v732_v14 = vmul.f32 %v929_v5, %v731_v11  ;;  %v507_v16 = vadd.f32 %v1236_v35, %v506_v13 }
 0x2b0   :  { %v931_v17 = vpop.eup %930  ;;  %v733_v18 = vadd.f32 %v929_v5, %v732_v14  ;;  %v869_v19 = vmul.f32 -1.442695, %v507_v16 }
 0x2b1   :  { %v933_v20 = vpop.eup %932  ;;  %v575_v22 = vadd.f32 1.0, %v931_v17 }
 0x2b2   :  { %v737_v23 = vsel %vm736_vm10, %v929_v5, %v733_v18  ;;  %v745_v24 = vmul.f32 %v933_v20, %v574_v7  ;;  %934 = vpow2.f32 %v869_v19  ;;  %vm750_vm12 = vweird.f32 %v933_v20 }
 0x2b3   :  { %v742_v25 = vsel %vm739_vm11, %v741_v21, %v737_v23  ;;  %936 = vrcp.f32 %v575_v22  ;;  %vm751_vm14 = vmor %vm749_vm13, %vm750_vm12  ;;  %v770_v43 = vand.u32 2147483648, %v575_v22  ;;  %v768_v46 = vand.u32 2147483647, %v575_v22 }
 0x2b4   :  { %829 = vst [vmem:[#allocation11 + $0x50] sm:$0xff] %v742_v25  ;;  %v746_v26 = vsub.f32 1.0, %v745_v24  ;;  %vm764_vm1 = vweird.f32 %v575_v22 }
 0x2b5   :  { %v509_v28 = vpop.f32.mrf.mxu3  ;;  %v771_v54 = vor.u32 1.1754944e-38, %v770_v43  ;;  %vm769_vm3 = vcmp.eq.f32.partialorder %v768_v46, 8.507059e+37 }
 0x2b6   :  { %v747_v29 = vmul.f32 %v933_v20, %v746_v26  ;;  %v510_v31 = vadd.f32 %v1236_v35, %v509_v28 }
 0x2b8   :  { %v935_v32 = vpop.eup %934  ;;  %v748_v33 = vadd.f32 %v933_v20, %v747_v29  ;;  %v870_v34 = vmul.f32 -1.442695, %v510_v31 }
 0x2b9   :  { %v937_v36 = vpop.eup %936  ;;  %v576_v38 = vadd.f32 1.0, %v935_v32 }
 0x2ba   :  { %v752_v39 = vsel %vm751_vm14, %v933_v20, %v748_v33  ;;  %v760_v40 = vmul.f32 %v937_v36, %v575_v22  ;;  %938 = vpow2.f32 %v870_v34  ;;  %vm765_vm0 = vweird.f32 %v937_v36 }
 0x2bb   :  { %v757_v41 = vsel %vm754_vm15, %v756_v37, %v752_v39  ;;  %940 = vrcp.f32 %v576_v38  ;;  %vm766_vm2 = vmor %vm764_vm1, %vm765_vm0  ;;  %v785_v59 = vand.u32 2147483648, %v576_v38  ;;  %vm779_vm5 = vweird.f32 %v576_v38 }
 0x2bc   :  { %830 = vst [vmem:[#allocation11 + $0x58] sm:$0xff] %v757_v41  ;;  %v761_v42 = vsub.f32 1.0, %v760_v40 }
 0x2bd   :  { %v512_v44 = vpop.f32.mrf.mxu3  ;;  %v786_v63 = vor.u32 1.1754944e-38, %v785_v59 }
 0x2be   :  { %v762_v45 = vmul.f32 %v937_v36, %v761_v42  ;;  %v513_v47 = vadd.f32 %v1236_v35, %v512_v44  ;;  %v783_v35 = vand.u32 2147483647, %v576_v38 }
 0x2c0   :  { %v939_v49 = vpop.eup %938  ;;  %v763_v51 = vadd.f32 %v937_v36, %v762_v45  ;;  %v871_v52 = vmul.f32 -1.442695, %v513_v47  ;;  %vm784_vm7 = vcmp.eq.f32.partialorder %v783_v35, 8.507059e+37 }
 0x2c1   :  { %v941_v53 = vpop.eup %940  ;;  %v577_v55 = vadd.f32 1.0, %v939_v49 }
 0x2c2   :  { %v767_v56 = vsel %vm766_vm2, %v937_v36, %v763_v51  ;;  %v775_v57 = vmul.f32 %v941_v53, %v576_v38  ;;  %942 = vpow2.f32 %v871_v52  ;;  %vm780_vm4 = vweird.f32 %v941_v53 }
 0x2c3   :  { %v772_v48 = vsel %vm769_vm3, %v771_v54, %v767_v56  ;;  %944 = vrcp.f32 %v577_v55  ;;  %vm781_vm6 = vmor %vm779_vm5, %vm780_vm4  ;;  %v800_v5 = vand.u32 2147483648, %v577_v55  ;;  %v798_v7 = vand.u32 2147483647, %v577_v55 }
 0x2c4   :  { %831 = vst [vmem:[#allocation11 + $0x60] sm:$0xff] %v772_v48  ;;  %v776_v58 = vsub.f32 1.0, %v775_v57  ;;  %vm794_vm9 = vweird.f32 %v577_v55 }
 0x2c5   :  { %v801_v10 = vor.u32 1.1754944e-38, %v800_v5  ;;  %vm799_vm11 = vcmp.eq.f32.partialorder %v798_v7, 8.507059e+37 }
 0x2c6   :  { %v777_v60 = vmul.f32 %v941_v53, %v776_v58 }
 0x2c8   :  { %v943_v61 = vpop.eup %942  ;;  %v778_v50 = vadd.f32 %v941_v53, %v777_v60 }
 0x2c9   :  { %v945_v62 = vpop.eup %944  ;;  %v578_v0 = vadd.f32 1.0, %v943_v61 }
 0x2ca   :  { %v782_v1 = vsel %vm781_vm6, %v941_v53, %v778_v50  ;;  %v790_v2 = vmul.f32 %v945_v62, %v577_v55  ;;  %vm795_vm8 = vweird.f32 %v945_v62 }
 0x2cb   :  { %v787_v3 = vsel %vm784_vm7, %v786_v63, %v782_v1  ;;  %946 = vrcp.f32 %v578_v0  ;;  %vm796_vm10 = vmor %vm794_vm9, %vm795_vm8  ;;  %v815_v15 = vand.u32 2147483648, %v578_v0  ;;  %v813_v17 = vand.u32 2147483647, %v578_v0 }
 0x2cc   :  { %832 = vst [vmem:[#allocation11 + $0x68] sm:$0xff] %v787_v3  ;;  %v791_v4 = vsub.f32 1.0, %v790_v2  ;;  %vm809_vm13 = vweird.f32 %v578_v0 }
 0x2cd   :  { %v816_v19 = vor.u32 1.1754944e-38, %v815_v15  ;;  %vm814_vm15 = vcmp.eq.f32.partialorder %v813_v17, 8.507059e+37 }
 0x2ce   :  { %v792_v6 = vmul.f32 %v945_v62, %v791_v4 }
 0x2d0   :  { %v793_v8 = vadd.f32 %v945_v62, %v792_v6 }
 0x2d1   :  { %v947_v9 = vpop.eup %946 }
 0x2d2   :  { %v797_v11 = vsel %vm796_vm10, %v945_v62, %v793_v8  ;;  %v805_v12 = vmul.f32 %v947_v9, %v578_v0  ;;  %vm810_vm12 = vweird.f32 %v947_v9 }
 0x2d3   :  { %v802_v13 = vsel %vm799_vm11, %v801_v10, %v797_v11  ;;  %vm811_vm14 = vmor %vm809_vm13, %vm810_vm12 }
 0x2d4   :  { %833 = vst [vmem:[#allocation11 + $0x70] sm:$0xff] %v802_v13  ;;  %v806_v14 = vsub.f32 1.0, %v805_v12 }
 0x2d6   :  { %v807_v16 = vmul.f32 %v947_v9, %v806_v14 }
 0x2d8   :  { %v808_v18 = vadd.f32 %v947_v9, %v807_v16 }
 0x2da   :  { %v812_v20 = vsel %vm811_vm14, %v947_v9, %v808_v18 }
 0x2db   :  { %v817_v21 = vsel %vm814_vm15, %v816_v19, %v812_v20 }
 0x2dc   :  { %834 = vst [vmem:[#allocation11 + $0x78] sm:$0xff] %v817_v21 }
 0x2dd   :  { %847 = dma.vmem_to_hbm [thread:$0]  %s840_s15, 2048, %s842_s20, [#allocation4], %s1101_s17, %s1101_s17, %s1102_s18  }
 0x2de   :  { %1098 = dma.done.wait [#allocation4], 2048  }
 0x2df   :  { %1099 = vsyncadd [#allocation4], 4294965248 }
 0x2e0   :  { %852 = vsyncpa [#allocation3], 1 }
 0x2e1   :  { %853 = vsyncpa [#allocation6], 1 }
 0x2e2   :  { %854 = vsyncpa [#allocation9], 1 }
 0x2e3   :  { %855 = vsyncpa [#allocation4], 1 }

</bundles_post_ra>
